<compile_context>
chip_gen: v6e
topology: v6e:2x2x1
jax: 0.10.0
libtpu: 0.0.40
codegen_flags: <defaults>
</compile_context>

<pallas_src>
import jax
import jax.numpy as jnp
from jax.experimental import pallas as pl
from jax.experimental.pallas import tpu as pltpu


def _embedding_net_kernel(x_ref, w1_ref, w2_ref, aux_ref, o_ref):
    """One grid step: fused MLP on a (tile, d_in) slab of the batch.

    aux_ref rows: [0] = BN-folded layer-1 bias, [1] = layer-2 bias (rows 2..7 unused).
    """
    # Linear1 with BN pre-folded into the weight/bias (MXU + one VPU add).
    h = (jnp.dot(x_ref[...], w1_ref[...], preferred_element_type=jnp.float32)
         + aux_ref[0:1, :])

    # ReLU (VPU).  Cast to W2's dtype so the optional bf16-operand path feeds the MXU
    # with matching operand dtypes (no-op when W2 is f32).
    h = jnp.maximum(h, 0.0).astype(w2_ref.dtype)

    # Linear2 (MXU) + bias -> single full-width lane-dense store.
    o_ref[...] = (jnp.dot(h, w2_ref[...], preferred_element_type=jnp.float32)
                  + aux_ref[1:2, :]).astype(o_ref.dtype)


def _num_tensorcores():
    """Best-effort TensorCore count per device (2 on v7x-style megacore, else 1)."""
    try:
        d = jax.devices()[0]
        for attr in ("num_cores", "core_count"):
            v = getattr(d, attr, None)
            if isinstance(v, int) and v > 0:
                return v
    except Exception:
        pass
    return 1


def _pick_row_tile(n, num_cores):
    """Row tile (multiple of 8) for the batch axis."""
    cap = 1024                              # big tiles track the HBM roofline best
    n8 = max(8, -(-n // 8) * 8)             # batch rounded up to a sublane multiple
    if num_cores <= 1 or n8 <= 8 * num_cores:
        # Single TC (v5e/v6e) or tiny batch: one maximal tile -> fewest grid steps.
        return min(n8, cap)
    # Multi-TC (v7x): make the step count a multiple of num_cores for even sharding.
    steps = max(num_cores, -(-n8 // cap))
    steps = -(-steps // num_cores) * num_cores
    tile = -(-n8 // steps)
    tile = -(-tile // 8) * 8
    return max(8, min(tile, cap))


def embedding_net_forward(x, params, *, eps=1e-5, out_dtype=None, matmul_dtype=None):
    """x: (N, input_size) -> (N, output_size), matching EmbeddingNet.forward (eval)."""
    w1, b1, gamma, beta, running_mean, running_var, w2, b2 = params
    n, d_in = x.shape
    d_out = w1.shape[1]
    out_dtype = out_dtype if out_dtype is not None else x.dtype

    # Fold BatchNorm1d (eval mode) into Linear1:
    #   BN(x@W1 + b1) = (x@W1 + b1) * scale + shift = x@(W1*scale) + (b1*scale + shift)
    scale = gamma * jax.lax.rsqrt(running_var + eps)
    shift = beta - running_mean * scale
    w1_f = (w1 * scale[None, :]).astype(jnp.float32)
    bias1 = b1 * scale + shift

    # Pack the two remaining per-feature vectors into one (8, d_out) aux block.
    aux = jnp.zeros((8, d_out), jnp.float32)
    aux = aux.at[0].set(bias1.astype(jnp.float32))
    aux = aux.at[1].set(b2.astype(jnp.float32))

    # Optional bf16 operands for the MXU (v5e is MXU-bound in f32).
    if matmul_dtype is not None:
        x = x.astype(matmul_dtype)
        w1_f = w1_f.astype(matmul_dtype)
        w2 = w2.astype(matmul_dtype)
    w2 = w2.astype(w1_f.dtype)

    num_cores = _num_tensorcores()
    tile = _pick_row_tile(n, num_cores)
    grid = (pl.cdiv(n, tile),)

    isz_x = jnp.dtype(x.dtype).itemsize
    isz_w = jnp.dtype(w1_f.dtype).itemsize
    isz_o = jnp.dtype(out_dtype).itemsize
    cost = pl.CostEstimate(
        flops=2 * n * (d_in + d_out) * d_out,
        transcendentals=0,
        bytes_accessed=(n * d_in * isz_x + n * d_out * isz_o
                        + (d_in * d_out + d_out * d_out) * isz_w + 8 * d_out * 4),
    )

    out = pl.pallas_call(
        _embedding_net_kernel,
        out_shape=jax.ShapeDtypeStruct((n, d_out), out_dtype),
        grid_spec=pltpu.PrefetchScalarGridSpec(
            num_scalar_prefetch=0,
            grid=grid,
            in_specs=[
                pl.BlockSpec((tile, d_in), lambda i: (i, 0)),    # activations (row-tiled)
                pl.BlockSpec((d_in, d_out), lambda i: (0, 0)),   # W1' (resident)
                pl.BlockSpec((d_out, d_out), lambda i: (0, 0)),  # W2  (resident)
                pl.BlockSpec((8, d_out), lambda i: (0, 0)),      # aux: bias1' / b2
            ],
            out_specs=pl.BlockSpec((tile, d_out), lambda i: (i, 0)),
        ),
        compiler_params=pltpu.CompilerParams(
            dimension_semantics=("parallel",),
        ),
        cost_estimate=cost,
    )(x, w1_f, w2, aux)
    return out


def _reference(x, params, eps=1e-5):
    """Pure-JAX reference matching EmbeddingNet.forward (eval mode)."""
    w1, b1, gamma, beta, running_mean, running_var, w2, b2 = params
    h = x @ w1 + b1
    h = (h - running_mean) / jnp.sqrt(running_var + eps) * gamma + beta
    h = jnp.maximum(h, 0.0)
    return h @ w2 + b2


if __name__ == "__main__":
    key = jax.random.PRNGKey(0)
    k_w1, k_w2, k_x, k_g, k_b, k_m, k_v = jax.random.split(key, 7)

    # Small shapes consistent with the module: batch=256, input_size=32, output_size=128.
    B, D_IN, D_OUT = 256, 32, 128

    # Linear weights: kaiming_normal_ (fan_in); biases filled with 0.01 (init_linear_weights).
    w1 = jax.random.normal(k_w1, (D_IN, D_OUT), jnp.float32) * jnp.sqrt(2.0 / D_IN)
    b1 = jnp.full((D_OUT,), 0.01, jnp.float32)
    w2 = jax.random.normal(k_w2, (D_OUT, D_OUT), jnp.float32) * jnp.sqrt(2.0 / D_OUT)
    b2 = jnp.full((D_OUT,), 0.01, jnp.float32)

    # Non-trivial "pretrained" BatchNorm1d parameters / running statistics.
    gamma = 1.0 + 0.1 * jax.random.normal(k_g, (D_OUT,), jnp.float32)
    beta = 0.1 * jax.random.normal(k_b, (D_OUT,), jnp.float32)
    running_mean = 0.1 * jax.random.normal(k_m, (D_OUT,), jnp.float32)
    running_var = jax.random.uniform(k_v, (D_OUT,), jnp.float32, 0.5, 1.5)

    params = (w1, b1, gamma, beta, running_mean, running_var, w2, b2)

    # Main check: tile-aligned batch.
    x = jax.random.normal(k_x, (B, D_IN), jnp.float32)
    out = jax.block_until_ready(embedding_net_forward(x, params))
    ref = _reference(x, params)
    assert out.shape == (B, D_OUT), out.shape
    max_err = float(jnp.max(jnp.abs(out - ref)))
    assert jnp.allclose(out, ref, atol=1e-3, rtol=1e-3), f"mismatch (max abs err {max_err})"

    # Secondary check: batch not a multiple of 8 -> exercises the partial trailing
    # block path (no host-side pad / slice).
    x_odd = jax.random.normal(k_x, (37, D_IN), jnp.float32)
    out_odd = jax.block_until_ready(embedding_net_forward(x_odd, params))
    ref_odd = _reference(x_odd, params)
    assert out_odd.shape == (37, D_OUT), out_odd.shape
    max_err_odd = float(jnp.max(jnp.abs(out_odd - ref_odd)))
    assert jnp.allclose(out_odd, ref_odd, atol=1e-3, rtol=1e-3), \
        f"mismatch on odd batch (max abs err {max_err_odd})"

    print("KERNEL_OK")
</pallas_src>

<mosaic_0001>
module attributes {stable_mosaic.version = 11 : i64} {
  func.func @_embedding_net_kernel(%arg0: i32, %arg1: memref<256x32xf32, #tpu.memory_space<vmem>>, %arg2: memref<32x128xf32, #tpu.memory_space<vmem>>, %arg3: memref<128x128xf32, #tpu.memory_space<vmem>>, %arg4: memref<8x128xf32, #tpu.memory_space<vmem>>, %arg5: memref<256x128xf32, #tpu.memory_space<vmem>>) attributes {dimension_semantics = [#tpu.dimension_semantics<parallel>], iteration_bounds = array<i64: 1>, scalar_prefetch = 0 : i64, scratch_operands = 0 : i64, tpu.core_type = #tpu.core_type<tc>, window_params = [{transform_indices = @transform_0, window_bounds = array<i64: 256, 32>}, {pipeline_mode = #tpu.pipeline_mode<synchronous>, transform_indices = @transform_1, window_bounds = array<i64: 32, 128>}, {pipeline_mode = #tpu.pipeline_mode<synchronous>, transform_indices = @transform_2, window_bounds = array<i64: 128, 128>}, {pipeline_mode = #tpu.pipeline_mode<synchronous>, transform_indices = @transform_3, window_bounds = array<i64: 8, 128>}, {transform_indices = @transform_4, window_bounds = array<i64: 256, 128>}]} {
    %c0 = arith.constant 0 : index
    %c0_0 = arith.constant 0 : index
    %0 = vector.load %arg1[%c0, %c0_0] : memref<256x32xf32, #tpu.memory_space<vmem>>, vector<256x32xf32>
    %c0_1 = arith.constant 0 : index
    %c0_2 = arith.constant 0 : index
    %1 = vector.load %arg2[%c0_1, %c0_2] : memref<32x128xf32, #tpu.memory_space<vmem>>, vector<32x128xf32>
    %cst = arith.constant dense<0.000000e+00> : vector<256x128xf32>
    %2 = tpu.matmul %0, %1, %cst {dimension_numbers = #tpu.dot_dimension_numbers<[1], [0], [0], [1], [0, 0, 1, 1], [], []>} : vector<256x32xf32>, vector<32x128xf32>, vector<256x128xf32> -> vector<256x128xf32>
    %c0_3 = arith.constant 0 : index
    %c0_4 = arith.constant 0 : index
    %3 = vector.load %arg4[%c0_3, %c0_4] : memref<8x128xf32, #tpu.memory_space<vmem>>, vector<1x128xf32>
    %4 = vector.broadcast %3 : vector<1x128xf32> to vector<256x128xf32>
    %5 = arith.addf %2, %4 : vector<256x128xf32>
    %cst_5 = arith.constant 0.000000e+00 : f32
    %6 = vector.broadcast %cst_5 : f32 to vector<256x128xf32>
    %7 = arith.maximumf %5, %6 : vector<256x128xf32>
    %c0_6 = arith.constant 0 : index
    %c0_7 = arith.constant 0 : index
    %8 = vector.load %arg3[%c0_6, %c0_7] : memref<128x128xf32, #tpu.memory_space<vmem>>, vector<128x128xf32>
    %cst_8 = arith.constant dense<0.000000e+00> : vector<256x128xf32>
    %9 = tpu.matmul %7, %8, %cst_8 {dimension_numbers = #tpu.dot_dimension_numbers<[1], [0], [0], [1], [0, 0, 1, 1], [], []>} : vector<256x128xf32>, vector<128x128xf32>, vector<256x128xf32> -> vector<256x128xf32>
    %c1 = arith.constant 1 : index
    %c0_9 = arith.constant 0 : index
    %10 = vector.load %arg4[%c1, %c0_9] : memref<8x128xf32, #tpu.memory_space<vmem>>, vector<1x128xf32>
    %11 = vector.broadcast %10 : vector<1x128xf32> to vector<256x128xf32>
    %12 = arith.addf %9, %11 : vector<256x128xf32>
    %c0_10 = arith.constant 0 : index
    %c0_11 = arith.constant 0 : index
    %13 = vector.load %arg5[%c0_10, %c0_11] : memref<256x128xf32, #tpu.memory_space<vmem>>, vector<256x128xf32>
    tpu.vector_store %arg5[%c0_10, %c0_11], %12 {strides = array<i32>} : memref<256x128xf32, #tpu.memory_space<vmem>>, vector<256x128xf32>,
    return
  }
  func.func @transform_0(%arg0: i32) -> (i32, i32) {
    %c0_i32 = arith.constant 0 : i32
    %c0_i32_0 = arith.constant 0 : i32
    return %arg0, %c0_i32 : i32, i32
  }
  func.func @transform_1(%arg0: i32) -> (i32, i32) {
    %c0_i32 = arith.constant 0 : i32
    %c0_i32_0 = arith.constant 0 : i32
    %c0_i32_1 = arith.constant 0 : i32
    return %c0_i32, %c0_i32_0 : i32, i32
  }
  func.func @transform_2(%arg0: i32) -> (i32, i32) {
    %c0_i32 = arith.constant 0 : i32
    %c0_i32_0 = arith.constant 0 : i32
    %c0_i32_1 = arith.constant 0 : i32
    return %c0_i32, %c0_i32_0 : i32, i32
  }
  func.func @transform_3(%arg0: i32) -> (i32, i32) {
    %c0_i32 = arith.constant 0 : i32
    %c0_i32_0 = arith.constant 0 : i32
    %c0_i32_1 = arith.constant 0 : i32
    return %c0_i32, %c0_i32_0 : i32, i32
  }
  func.func @transform_4(%arg0: i32) -> (i32, i32) {
    %c0_i32 = arith.constant 0 : i32
    %c0_i32_0 = arith.constant 0 : i32
    return %arg0, %c0_i32 : i32, i32
  }
}

</mosaic_0001>

<bundles_post_ra>
// kernel: tpu_custom_call.1
= control target key start
LH: loop header
LB: loop body
LE: loop exit
PB: predicated region body
PF: predicated region fallthrough
CT: control target
= control target key end

     0   :  { %vm59_vm0 = vcmask 261120   ;;  %s1311_s0 = inlined_call_operand.vmem [shape: f32[256,32], index: 0, kind: input, shape index: {}]   ;;  %s1312_s1 = inlined_call_operand.vmem [shape: f32[32,128], index: 1, kind: input, shape index: {}]   ;;  %s1313_s2 = inlined_call_operand.vmem [shape: f32[128,128], index: 2, kind: input, shape index: {}]   ;;  %s1314_s3 = inlined_call_operand.vmem [shape: f32[8,128], index: 3, kind: input, shape index: {}]   ;;  %s1315_s4 = inlined_call_operand.hbm [shape: f32[256,128], index: 4, kind: output, shape index: {}]  }
   0x1   :  { %v53_v0 = vld [vmem:[%s1312_s1 + $0x18] sm:$0xff]  ;;  %v52_v1 = vld [vmem:[%s1312_s1 + $0x10] sm:$0xff]  ;;  %v18_v2 = vld [vmem:[%s1311_s0] sm:$0xff] }
   0x2   :  { %825 = vmatprep.subr.mxu0 %v53_v0  ;;  %v51_v3 = vld [vmem:[%s1312_s1 + $0x8] sm:$0xff]  ;;  %833 = vmatprep.mubr.msk.f32.mxu0 %vm59_vm0, %v18_v2  ;;  %v50_v4 = vld [vmem:[%s1312_s1] sm:$0xff]  ;;  %v20_v6 = vld [vmem:[%s1311_s0 + $0x10] sm:$0xff] }
   0x3   :  { %826 = vmatpush3.msra.mxu0 %v53_v0  ;;  %v19_v5 = vld [vmem:[%s1311_s0 + $0x8] sm:$0xff]  ;;  %v21_v7 = vld [vmem:[%s1311_s0 + $0x18] sm:$0xff]  ;;  %v22_v8 = vld [vmem:[%s1311_s0 + $0x20] sm:$0xff] }
   0x4   :  { %827 = vmatprep.subr.mxu0 %v52_v1  ;;  %v428_v9 = vld [vmem:[%s1313_s2 + $0x78] sm:$0xff]  ;;  %v427_v10 = vld [vmem:[%s1313_s2 + $0x70] sm:$0xff]  ;;  %v23_v11 = vld [vmem:[%s1311_s0 + $0x28] sm:$0xff] }
   0x5   :  { %828 = vmatpush3.msra.mxu0 %v52_v1  ;;  %v426_v12 = vld [vmem:[%s1313_s2 + $0x68] sm:$0xff]  ;;  %v24_v13 = vld [vmem:[%s1311_s0 + $0x30] sm:$0xff]  ;;  %961 = vmatprep.subr.mxu1 %v428_v9  ;;  %v425_v14 = vld [vmem:[%s1313_s2 + $0x60] sm:$0xff] }
   0x6   :  { %829 = vmatprep.subr.mxu0 %v51_v3  ;;  %977 = vmatpush3.msra.mxu1 %v428_v9 }
   0x7   :  { %830 = vmatpush3.msra.mxu0 %v51_v3 }
   0x8   :  { %831 = vmatprep.subr.mxu0 %v50_v4 }
   0x9   :  { %832 = vmatpush3.msra.mxu0 %v50_v4 }
   0xa   :  { %834 = vmatmul.mubr.msk.f32.vlgmr.msra.gmra.mxu0 %vm59_vm0, %v19_v5  ;;  %881 = vmatprep.subr.mxu0 %v428_v9 }
   0xb   :  { %836 = vmatprep.mubr.msk.f32.mxu0 %vm59_vm0, %v20_v6  ;;  %882 = vmatpush3.msra.mxu0 %v428_v9 }
   0xc   :  { %883 = vmatprep.subr.mxu0 %v427_v10 }
   0xd   :  { %884 = vmatpush3.msra.mxu0 %v427_v10 }
   0xe   :  { %837 = vmatmul.mubr.msk.f32.gmra.mxu0 %vm59_vm0, %v21_v7 }
   0xf   :  { %839 = vmatprep.mubr.msk.f32.mxu0 %vm59_vm0, %v22_v8 }
  0x10   :  { %9 = vsyncpa [#allocation3], 0  ;;  %885 = vmatprep.subr.mxu0 %v426_v12  ;;  %v25_v15 = vld [vmem:[%s1311_s0 + $0x38] sm:$0xff]  ;;  %v26_v17 = vld [vmem:[%s1311_s0 + $0x40] sm:$0xff]  ;;  %962 = vmatprep.subr.mxu1 %v427_v10 }
  0x11   :  { %886 = vmatpush3.msra.mxu0 %v426_v12  ;;  %v424_v16 = vld [vmem:[%s1313_s2 + $0x58] sm:$0xff]  ;;  %v423_v18 = vld [vmem:[%s1313_s2 + $0x50] sm:$0xff]  ;;  %978 = vmatpush3.msra.mxu1 %v427_v10  ;;  %v27_v19 = vld [vmem:[%s1311_s0 + $0x48] sm:$0xff] }
  0x12   :  { %840 = vmatmul.mubr.msk.f32.gmra.mxu0 %vm59_vm0, %v23_v11  ;;  %887 = vmatprep.subr.mxu0 %v425_v14  ;;  %v422_v20 = vld [vmem:[%s1313_s2 + $0x48] sm:$0xff]  ;;  %v28_v21 = vld [vmem:[%s1311_s0 + $0x50] sm:$0xff]  ;;  %v421_v22 = vld [vmem:[%s1313_s2 + $0x40] sm:$0xff] }
  0x13   :  { %842 = vmatprep.mubr.msk.f32.mxu0 %vm59_vm0, %v24_v13  ;;  %888 = vmatpush3.msra.mxu0 %v425_v14  ;;  %v29_v23 = vld [vmem:[%s1311_s0 + $0x58] sm:$0xff]  ;;  %v30_v25 = vld [vmem:[%s1311_s0 + $0x60] sm:$0xff]  ;;  %v419_v26 = vld [vmem:[%s1313_s2 + $0x30] sm:$0xff] }
  0x14   :  { %889 = vmatprep.subr.mxu0 %v424_v16  ;;  %963 = vmatprep.subr.mxu1 %v426_v12  ;;  %v420_v24 = vld [vmem:[%s1313_s2 + $0x38] sm:$0xff]  ;;  %v31_v27 = vld [vmem:[%s1311_s0 + $0x68] sm:$0xff]  ;;  %v32_v29 = vld [vmem:[%s1311_s0 + $0x70] sm:$0xff] }
  0x15   :  { %890 = vmatpush3.msra.mxu0 %v424_v16  ;;  %979 = vmatpush3.msra.mxu1 %v426_v12  ;;  %v418_v28 = vld [vmem:[%s1313_s2 + $0x28] sm:$0xff]  ;;  %v417_v30 = vld [vmem:[%s1313_s2 + $0x20] sm:$0xff]  ;;  %v33_v31 = vld [vmem:[%s1311_s0 + $0x78] sm:$0xff] }
  0x16   :  { %843 = vmatmul.mubr.msk.f32.gmra.mxu0 %vm59_vm0, %v25_v15  ;;  %891 = vmatprep.subr.mxu0 %v423_v18  ;;  %v34_v32 = vld [vmem:[%s1311_s0 + $0x80] sm:$0xff]  ;;  %v35_v33 = vld [vmem:[%s1311_s0 + $0x88] sm:$0xff]  ;;  %v36_v34 = vld [vmem:[%s1311_s0 + $0x90] sm:$0xff] }
  0x17   :  { %845 = vmatprep.mubr.msk.f32.mxu0 %vm59_vm0, %v26_v17  ;;  %892 = vmatpush3.msra.mxu0 %v423_v18  ;;  %v37_v35 = vld [vmem:[%s1311_s0 + $0x98] sm:$0xff]  ;;  %v38_v36 = vld [vmem:[%s1311_s0 + $0xa0] sm:$0xff]  ;;  %v39_v37 = vld [vmem:[%s1311_s0 + $0xa8] sm:$0xff] }
  0x18   :  { %893 = vmatprep.subr.mxu0 %v422_v20  ;;  %964 = vmatprep.subr.mxu1 %v425_v14  ;;  %v40_v38 = vld [vmem:[%s1311_s0 + $0xb0] sm:$0xff]  ;;  %v41_v39 = vld [vmem:[%s1311_s0 + $0xb8] sm:$0xff]  ;;  %v42_v40 = vld [vmem:[%s1311_s0 + $0xc0] sm:$0xff] }
  0x19   :  { %894 = vmatpush3.msra.mxu0 %v422_v20  ;;  %980 = vmatpush3.msra.mxu1 %v425_v14  ;;  %v43_v41 = vld [vmem:[%s1311_s0 + $0xc8] sm:$0xff]  ;;  %v44_v42 = vld [vmem:[%s1311_s0 + $0xd0] sm:$0xff]  ;;  %v45_v43 = vld [vmem:[%s1311_s0 + $0xd8] sm:$0xff] }
  0x1a   :  { %846 = vmatmul.mubr.msk.f32.gmra.mxu0 %vm59_vm0, %v27_v19  ;;  %895 = vmatprep.subr.mxu0 %v421_v22  ;;  %v46_v44 = vld [vmem:[%s1311_s0 + $0xe0] sm:$0xff]  ;;  %v47_v45 = vld [vmem:[%s1311_s0 + $0xe8] sm:$0xff]  ;;  %v48_v46 = vld [vmem:[%s1311_s0 + $0xf0] sm:$0xff] }
  0x1b   :  { %848 = vmatprep.mubr.msk.f32.mxu0 %vm59_vm0, %v28_v21  ;;  %896 = vmatpush3.msra.mxu0 %v421_v22  ;;  %v49_v47 = vld [vmem:[%s1311_s0 + $0xf8] sm:$0xff]  ;;  %v415_v49 = vld [vmem:[%s1313_s2 + $0x10] sm:$0xff]  ;;  %v414_v50 = vld [vmem:[%s1313_s2 + $0x8] sm:$0xff] }
  0x1c   :  { %897 = vmatprep.subr.mxu0 %v420_v24  ;;  %965 = vmatprep.subr.mxu1 %v424_v16  ;;  %v416_v48 = vld [vmem:[%s1313_s2 + $0x18] sm:$0xff]  ;;  %v413_v51 = vld [vmem:[%s1313_s2] sm:$0xff] }
  0x1d   :  { %898 = vmatpush3.msra.mxu0 %v420_v24  ;;  %981 = vmatpush3.msra.mxu1 %v424_v16  ;;  %v1237_v52 = vld [vmem:[%s1314_s3] ss:$0 sm:$0xff] }
  0x1e   :  { %849 = vmatmul.mubr.msk.f32.gmra.mxu0 %vm59_vm0, %v29_v23  ;;  %899 = vmatprep.subr.mxu0 %v419_v26 }
  0x1f   :  { %851 = vmatprep.mubr.msk.f32.mxu0 %vm59_vm0, %v30_v25  ;;  %900 = vmatpush3.msra.mxu0 %v419_v26 }
  0x20   :  { %901 = vmatprep.subr.mxu0 %v418_v28  ;;  %966 = vmatprep.subr.mxu1 %v423_v18 }
  0x21   :  { %902 = vmatpush3.msra.mxu0 %v418_v28  ;;  %982 = vmatpush3.msra.mxu1 %v423_v18 }
  0x22   :  { %852 = vmatmul.mubr.msk.f32.gmra.mxu0 %vm59_vm0, %v31_v27  ;;  %903 = vmatprep.subr.mxu0 %v417_v30 }
  0x23   :  { %854 = vmatprep.mubr.msk.f32.mxu0 %vm59_vm0, %v32_v29  ;;  %904 = vmatpush3.msra.mxu0 %v417_v30 }
  0x24   :  { %967 = vmatprep.subr.mxu1 %v422_v20  ;;  %905 = vmatprep.subr.mxu0 %v416_v48 }
  0x25   :  { %983 = vmatpush3.msra.mxu1 %v422_v20  ;;  %906 = vmatpush3.msra.mxu0 %v416_v48 }
  0x26   :  { %855 = vmatmul.mubr.msk.f32.gmra.mxu0 %vm59_vm0, %v33_v31  ;;  %968 = vmatprep.subr.mxu1 %v421_v22 }
  0x27   :  { %857 = vmatprep.mubr.msk.f32.mxu0 %vm59_vm0, %v34_v32  ;;  %984 = vmatpush3.msra.mxu1 %v421_v22 }
  0x28   :  { %969 = vmatprep.subr.mxu1 %v420_v24  ;;  %907 = vmatprep.subr.mxu0 %v415_v49 }
  0x29   :  { %985 = vmatpush3.msra.mxu1 %v420_v24  ;;  %908 = vmatpush3.msra.mxu0 %v415_v49 }
  0x2a   :  { %858 = vmatmul.mubr.msk.f32.gmra.mxu0 %vm59_vm0, %v35_v33  ;;  %970 = vmatprep.subr.mxu1 %v419_v26 }
  0x2b   :  { %860 = vmatprep.mubr.msk.f32.mxu0 %vm59_vm0, %v36_v34  ;;  %986 = vmatpush3.msra.mxu1 %v419_v26 }
  0x2c   :  { %971 = vmatprep.subr.mxu1 %v418_v28  ;;  %909 = vmatprep.subr.mxu0 %v414_v50 }
  0x2d   :  { %987 = vmatpush3.msra.mxu1 %v418_v28  ;;  %910 = vmatpush3.msra.mxu0 %v414_v50 }
  0x2e   :  { %861 = vmatmul.mubr.msk.f32.gmra.mxu0 %vm59_vm0, %v37_v35  ;;  %972 = vmatprep.subr.mxu1 %v417_v30 }
  0x2f   :  { %863 = vmatprep.mubr.msk.f32.mxu0 %vm59_vm0, %v38_v36  ;;  %988 = vmatpush3.msra.mxu1 %v417_v30 }
  0x30   :  { %973 = vmatprep.subr.mxu1 %v416_v48  ;;  %911 = vmatprep.subr.mxu0 %v413_v51 }
  0x31   :  { %989 = vmatpush3.msra.mxu1 %v416_v48  ;;  %912 = vmatpush3.msra.mxu0 %v413_v51 }
  0x32   :  { %864 = vmatmul.mubr.msk.f32.gmra.mxu0 %vm59_vm0, %v39_v37  ;;  %974 = vmatprep.subr.mxu1 %v415_v49 }
  0x33   :  { %866 = vmatprep.mubr.msk.f32.mxu0 %vm59_vm0, %v40_v38  ;;  %990 = vmatpush3.msra.mxu1 %v415_v49 }
  0x34   :  { %975 = vmatprep.subr.mxu1 %v414_v50 }
  0x35   :  { %991 = vmatpush3.msra.mxu1 %v414_v50 }
  0x36   :  { %867 = vmatmul.mubr.msk.f32.gmra.mxu0 %vm59_vm0, %v41_v39  ;;  %976 = vmatprep.subr.mxu1 %v413_v51 }
  0x37   :  { %869 = vmatprep.mubr.msk.f32.mxu0 %vm59_vm0, %v42_v40  ;;  %992 = vmatpush3.msra.mxu1 %v413_v51 }
  0x3a   :  { %870 = vmatmul.mubr.msk.f32.gmra.mxu0 %vm59_vm0, %v43_v41 }
  0x3b   :  { %872 = vmatprep.mubr.msk.f32.mxu0 %vm59_vm0, %v44_v42 }
  0x3e   :  { %873 = vmatmul.mubr.msk.f32.gmra.mxu0 %vm59_vm0, %v45_v43 }
  0x3f   :  { %875 = vmatprep.mubr.msk.f32.mxu0 %vm59_vm0, %v46_v44 }
  0x42   :  { %876 = vmatmul.mubr.msk.f32.gmra.mxu0 %vm59_vm0, %v47_v45 }
  0x43   :  { %878 = vmatprep.mubr.msk.f32.mxu0 %vm59_vm0, %v48_v46 }
  0x46   :  { %879 = vmatmul.mubr.msk.f32.gmra.mxu0 %vm59_vm0, %v49_v47 }
  0xca   :  { %v835_v53 = vpop.f32.mrf.mxu0 }
  0xcb   :  { %v228_v54 = vadd.f32 %v835_v53, %v1237_v52 }
  0xcc   :  { %v222_v55 = vpop.f32.mrf.mxu0 }
  0xcd   :  { %v223_v56 = vadd.f32 %v1237_v52, %v222_v55  ;;  %v382_v59 = vmax.f32 %v228_v54, 0.0 }
  0xce   :  { %v838_v57 = vpop.f32.mrf.mxu0 }
  0xcf   :  { %v381_v58 = vmax.f32 %v223_v56, 0.0  ;;  %v238_v60 = vadd.f32 %v838_v57, %v1237_v52 }
  0xd0   :  { %v232_v61 = vpop.f32.mrf.mxu0 }
  0xd1   :  { %v233_v62 = vadd.f32 %v1237_v52, %v232_v61  ;;  %913 = vmatprep.mubr.f32.mxu0 %v381_v58  ;;  %v384_v1 = vmax.f32 %v238_v60, 0.0 }
  0xd2   :  { %v841_v63 = vpop.f32.mrf.mxu0  ;;  %914 = vmatmul.mubr.f32.vlgmr.msra.gmra.mxu0 %v382_v59 }
  0xd3   :  { %v383_v0 = vmax.f32 %v233_v62, 0.0  ;;  %v248_v2 = vadd.f32 %v841_v63, %v1237_v52 }
  0xd4   :  { %v242_v3 = vpop.f32.mrf.mxu0 }
  0xd5   :  { %v243_v4 = vadd.f32 %v1237_v52, %v242_v3  ;;  %916 = vmatprep.mubr.f32.mxu0 %v383_v0  ;;  %v386_v7 = vmax.f32 %v248_v2, 0.0 }
  0xd6   :  { %v844_v5 = vpop.f32.mrf.mxu0  ;;  %917 = vmatmul.mubr.f32.gmra.mxu0 %v384_v1 }
  0xd7   :  { %v385_v6 = vmax.f32 %v243_v4, 0.0  ;;  %v258_v8 = vadd.f32 %v844_v5, %v1237_v52 }
  0xd8   :  { %v252_v9 = vpop.f32.mrf.mxu0 }
  0xd9   :  { %919 = vmatprep.mubr.f32.mxu0 %v385_v6  ;;  %v253_v10 = vadd.f32 %v1237_v52, %v252_v9  ;;  %v388_v13 = vmax.f32 %v258_v8, 0.0 }
  0xda   :  { %v847_v11 = vpop.f32.mrf.mxu0  ;;  %920 = vmatmul.mubr.f32.gmra.mxu0 %v386_v7 }
  0xdb   :  { %v387_v12 = vmax.f32 %v253_v10, 0.0  ;;  %v268_v14 = vadd.f32 %v847_v11, %v1237_v52 }
  0xdc   :  { %v262_v15 = vpop.f32.mrf.mxu0 }
  0xdd   :  { %v263_v16 = vadd.f32 %v1237_v52, %v262_v15  ;;  %922 = vmatprep.mubr.f32.mxu1 %v387_v12  ;;  %v390_v19 = vmax.f32 %v268_v14, 0.0 }
  0xde   :  { %v850_v17 = vpop.f32.mrf.mxu0  ;;  %923 = vmatmul.mubr.f32.vlgmr.msra.gmra.mxu1 %v388_v13 }
  0xdf   :  { %v389_v18 = vmax.f32 %v263_v16, 0.0  ;;  %v278_v20 = vadd.f32 %v850_v17, %v1237_v52 }
  0xe0   :  { %v272_v21 = vpop.f32.mrf.mxu0 }
  0xe1   :  { %v273_v22 = vadd.f32 %v1237_v52, %v272_v21  ;;  %925 = vmatprep.mubr.f32.mxu1 %v389_v18  ;;  %v392_v25 = vmax.f32 %v278_v20, 0.0 }
  0xe2   :  { %v853_v23 = vpop.f32.mrf.mxu0  ;;  %926 = vmatmul.mubr.f32.gmra.mxu1 %v390_v19 }
  0xe3   :  { %v391_v24 = vmax.f32 %v273_v22, 0.0  ;;  %v288_v26 = vadd.f32 %v853_v23, %v1237_v52  ;;  %v1274_v22 = vld [vmem:[%s1314_s3 + $0x1] ss:$0 sm:$0xff]  ;;  %s1018_s3 = smov [#allocation2]  }
  0xe4   :  { %v282_v27 = vpop.f32.mrf.mxu0  ;;  %s696_s13 = sshll.u32 %s1018_s3, 4  ;;  %s697_s13 = int_to_ptr.vmem [resolvable:$true] %s696_s13 }
  0xe5   :  { %v283_v28 = vadd.f32 %v1237_v52, %v282_v27  ;;  %928 = vmatprep.mubr.f32.mxu1 %v391_v24  ;;  %v394_v31 = vmax.f32 %v288_v26, 0.0  ;;  %s996_s14 = scalar_lea.vmem %s697_s13, 4096  ;;  %p1001_p1 = scmp.lt.s32.totalorder %s697_s13, %s697_s13 }
  0xe6   :  { %v856_v29 = vpop.f32.mrf.mxu0  ;;  %929 = vmatmul.mubr.f32.gmra.mxu1 %v392_v25  ;;  %p997_p0 = scmp.ne.s32.totalorder %s697_s13, %s996_s14  ;;  %p1002_p2 = scmp.lt.s32.totalorder %s996_s14, %s996_s14 }
  0xe7   :  { %v393_v30 = vmax.f32 %v283_v28, 0.0  ;;  %v298_v32 = vadd.f32 %v856_v29, %v1237_v52 }
  0xe8   :  { %v292_v33 = vpop.f32.mrf.mxu0  ;;  %p1003_p3 = por %p1002_p2, %p1001_p1 }
  0xe9   :  { %v293_v34 = vadd.f32 %v1237_v52, %v292_v33  ;;  %931 = vmatprep.mubr.f32.mxu1 %v393_v30  ;;  %v396_v37 = vmax.f32 %v298_v32, 0.0 }
  0xea   :  { %v859_v35 = vpop.f32.mrf.mxu0  ;;  %932 = vmatmul.mubr.f32.gmra.mxu1 %v394_v31  ;;  %p1004_p4 = pnand %p1003_p3, %p997_p0 }
  0xeb   :  { %v395_v36 = vmax.f32 %v293_v34, 0.0  ;;  %v308_v38 = vadd.f32 %v859_v35, %v1237_v52 }
  0xec   :  { %v302_v39 = vpop.f32.mrf.mxu0 }
  0xed   :  { %v303_v40 = vadd.f32 %v1237_v52, %v302_v39  ;;  %934 = vmatprep.mubr.f32.mxu1 %v395_v36  ;;  %v398_v43 = vmax.f32 %v308_v38, 0.0 }
  0xee   :  { %v862_v41 = vpop.f32.mrf.mxu0  ;;  %935 = vmatmul.mubr.f32.gmra.mxu1 %v396_v37 }
  0xef   :  { %v397_v42 = vmax.f32 %v303_v40, 0.0  ;;  %v318_v44 = vadd.f32 %v862_v41, %v1237_v52 }
  0xf0   :  { %v312_v45 = vpop.f32.mrf.mxu0 }
  0xf1   :  { %v313_v46 = vadd.f32 %v1237_v52, %v312_v45  ;;  %937 = vmatprep.mubr.f32.mxu1 %v397_v42  ;;  %v400_v49 = vmax.f32 %v318_v44, 0.0 }
  0xf2   :  { %v865_v47 = vpop.f32.mrf.mxu0  ;;  %938 = vmatmul.mubr.f32.gmra.mxu1 %v398_v43 }
  0xf3   :  { %v399_v48 = vmax.f32 %v313_v46, 0.0  ;;  %v328_v50 = vadd.f32 %v865_v47, %v1237_v52 }
  0xf4   :  { %v322_v51 = vpop.f32.mrf.mxu0 }
  0xf5   :  { %v323_v53 = vadd.f32 %v1237_v52, %v322_v51  ;;  %940 = vmatprep.mubr.f32.mxu1 %v399_v48  ;;  %v402_v56 = vmax.f32 %v328_v50, 0.0 }
  0xf6   :  { %v868_v54 = vpop.f32.mrf.mxu0  ;;  %941 = vmatmul.mubr.f32.gmra.mxu1 %v400_v49 }
  0xf7   :  { %v401_v55 = vmax.f32 %v323_v53, 0.0  ;;  %v338_v57 = vadd.f32 %v868_v54, %v1237_v52 }
  0xf8   :  { %v332_v58 = vpop.f32.mrf.mxu0 }
  0xf9   :  { %v333_v59 = vadd.f32 %v1237_v52, %v332_v58  ;;  %943 = vmatprep.mubr.f32.mxu1 %v401_v55  ;;  %v404_v62 = vmax.f32 %v338_v57, 0.0 }
  0xfa   :  { %v871_v60 = vpop.f32.mrf.mxu0  ;;  %944 = vmatmul.mubr.f32.gmra.mxu1 %v402_v56 }
  0xfb   :  { %v403_v61 = vmax.f32 %v333_v59, 0.0  ;;  %v348_v63 = vadd.f32 %v871_v60, %v1237_v52 }
  0xfc   :  { %v342_v0 = vpop.f32.mrf.mxu0 }
  0xfd   :  { %v343_v1 = vadd.f32 %v1237_v52, %v342_v0  ;;  %946 = vmatprep.mubr.f32.mxu1 %v403_v61  ;;  %v406_v4 = vmax.f32 %v348_v63, 0.0 }
  0xfe   :  { %v874_v2 = vpop.f32.mrf.mxu0  ;;  %947 = vmatmul.mubr.f32.gmra.mxu1 %v404_v62 }
  0xff   :  { %v405_v3 = vmax.f32 %v343_v1, 0.0  ;;  %v358_v5 = vadd.f32 %v874_v2, %v1237_v52 }
 0x100   :  { %v352_v6 = vpop.f32.mrf.mxu0 }
 0x101   :  { %v353_v7 = vadd.f32 %v1237_v52, %v352_v6  ;;  %949 = vmatprep.mubr.f32.mxu1 %v405_v3  ;;  %v408_v10 = vmax.f32 %v358_v5, 0.0 }
 0x102   :  { %v877_v8 = vpop.f32.mrf.mxu0  ;;  %950 = vmatmul.mubr.f32.gmra.mxu1 %v406_v4 }
 0x103   :  { %v407_v9 = vmax.f32 %v353_v7, 0.0  ;;  %v368_v11 = vadd.f32 %v877_v8, %v1237_v52 }
 0x104   :  { %v362_v12 = vpop.f32.mrf.mxu0 }
 0x105   :  { %v363_v13 = vadd.f32 %v1237_v52, %v362_v12  ;;  %952 = vmatprep.mubr.f32.mxu1 %v407_v9  ;;  %v410_v16 = vmax.f32 %v368_v11, 0.0 }
 0x106   :  { %v880_v14 = vpop.f32.mrf.mxu0  ;;  %953 = vmatmul.mubr.f32.gmra.mxu1 %v408_v10 }
 0x107   :  { %v409_v15 = vmax.f32 %v363_v13, 0.0  ;;  %v378_v17 = vadd.f32 %v880_v14, %v1237_v52 }
 0x108   :  { %v372_v18 = vpop.f32.mrf.mxu0 }
 0x109   :  { %v373_v19 = vadd.f32 %v1237_v52, %v372_v18  ;;  %955 = vmatprep.mubr.f32.mxu1 %v409_v15  ;;  %v412_v21 = vmax.f32 %v378_v17, 0.0 }
 0x10a   :  { %956 = vmatmul.mubr.f32.gmra.mxu1 %v410_v16 }
 0x10b   :  { %v411_v20 = vmax.f32 %v373_v19, 0.0 }
 0x10d   :  { %958 = vmatprep.mubr.f32.mxu1 %v411_v20 }
 0x10e   :  { %959 = vmatmul.mubr.f32.gmra.mxu1 %v412_v21 }
 0x192   :  { %v915_v23 = vpop.f32.mrf.mxu0 }
 0x193   :  { %v506_v24 = vadd.f32 %v915_v23, %v1274_v22 }
 0x194   :  { %v500_v25 = vpop.f32.mrf.mxu0 }
 0x195   :  { %660 = vst [vmem:[#allocation2 + $0x8] sm:$0xff] %v506_v24  ;;  %v501_v26 = vadd.f32 %v1274_v22, %v500_v25 }
 0x196   :  { %v918_v27 = vpop.f32.mrf.mxu0 }
 0x197   :  { %659 = vst [vmem:[#allocation2] sm:$0xff] %v501_v26  ;;  %v516_v52 = vadd.f32 %v918_v27, %v1274_v22 }
 0x198   :  { %v510_v28 = vpop.f32.mrf.mxu0 }
 0x199   :  { %662 = vst [vmem:[#allocation2 + $0x18] sm:$0xff] %v516_v52  ;;  %v511_v29 = vadd.f32 %v1274_v22, %v510_v28 }
 0x19a   :  { %v921_v30 = vpop.f32.mrf.mxu0 }
 0x19b   :  { %661 = vst [vmem:[#allocation2 + $0x10] sm:$0xff] %v511_v29  ;;  %v526_v31 = vadd.f32 %v921_v30, %v1274_v22 }
 0x19c   :  { %v520_v32 = vpop.f32.mrf.mxu0 }
 0x19d   :  { %664 = vst [vmem:[#allocation2 + $0x28] sm:$0xff] %v526_v31  ;;  %v521_v33 = vadd.f32 %v1274_v22, %v520_v32 }
 0x19e   :  { %v924_v34 = vpop.f32.mrf.mxu1 }
 0x19f   :  { %663 = vst [vmem:[#allocation2 + $0x20] sm:$0xff] %v521_v33  ;;  %v536_v35 = vadd.f32 %v924_v34, %v1274_v22 }
 0x1a0   :  { %v530_v36 = vpop.f32.mrf.mxu1 }
 0x1a1   :  { %666 = vst [vmem:[#allocation2 + $0x38] sm:$0xff] %v536_v35  ;;  %v531_v37 = vadd.f32 %v1274_v22, %v530_v36 }
 0x1a2   :  { %v927_v38 = vpop.f32.mrf.mxu1 }
 0x1a3   :  { %665 = vst [vmem:[#allocation2 + $0x30] sm:$0xff] %v531_v37  ;;  %v546_v39 = vadd.f32 %v927_v38, %v1274_v22 }
 0x1a4   :  { %v540_v40 = vpop.f32.mrf.mxu1 }
 0x1a5   :  { %668 = vst [vmem:[#allocation2 + $0x48] sm:$0xff] %v546_v39  ;;  %v541_v41 = vadd.f32 %v1274_v22, %v540_v40 }
 0x1a6   :  { %v930_v42 = vpop.f32.mrf.mxu1 }
 0x1a7   :  { %667 = vst [vmem:[#allocation2 + $0x40] sm:$0xff] %v541_v41  ;;  %v556_v43 = vadd.f32 %v930_v42, %v1274_v22 }
 0x1a8   :  { %v550_v44 = vpop.f32.mrf.mxu1 }
 0x1a9   :  { %670 = vst [vmem:[#allocation2 + $0x58] sm:$0xff] %v556_v43  ;;  %v551_v45 = vadd.f32 %v1274_v22, %v550_v44 }
 0x1aa   :  { %v933_v46 = vpop.f32.mrf.mxu1 }
 0x1ab   :  { %669 = vst [vmem:[#allocation2 + $0x50] sm:$0xff] %v551_v45  ;;  %v566_v47 = vadd.f32 %v933_v46, %v1274_v22 }
 0x1ac   :  { %v560_v48 = vpop.f32.mrf.mxu1 }
 0x1ad   :  { %672 = vst [vmem:[#allocation2 + $0x68] sm:$0xff] %v566_v47  ;;  %v561_v49 = vadd.f32 %v1274_v22, %v560_v48 }
 0x1ae   :  { %v936_v50 = vpop.f32.mrf.mxu1 }
 0x1af   :  { %671 = vst [vmem:[#allocation2 + $0x60] sm:$0xff] %v561_v49  ;;  %v576_v51 = vadd.f32 %v936_v50, %v1274_v22 }
 0x1b0   :  { %v570_v53 = vpop.f32.mrf.mxu1 }
 0x1b1   :  { %674 = vst [vmem:[#allocation2 + $0x78] sm:$0xff] %v576_v51  ;;  %v571_v54 = vadd.f32 %v1274_v22, %v570_v53 }
 0x1b2   :  { %v939_v55 = vpop.f32.mrf.mxu1 }
 0x1b3   :  { %673 = vst [vmem:[#allocation2 + $0x70] sm:$0xff] %v571_v54  ;;  %v586_v56 = vadd.f32 %v939_v55, %v1274_v22 }
 0x1b4   :  { %v580_v57 = vpop.f32.mrf.mxu1 }
 0x1b5   :  { %676 = vst [vmem:[#allocation2 + $0x88] sm:$0xff] %v586_v56  ;;  %v581_v58 = vadd.f32 %v1274_v22, %v580_v57 }
 0x1b6   :  { %v942_v59 = vpop.f32.mrf.mxu1 }
 0x1b7   :  { %675 = vst [vmem:[#allocation2 + $0x80] sm:$0xff] %v581_v58  ;;  %v596_v60 = vadd.f32 %v942_v59, %v1274_v22 }
 0x1b8   :  { %v590_v61 = vpop.f32.mrf.mxu1 }
 0x1b9   :  { %678 = vst [vmem:[#allocation2 + $0x98] sm:$0xff] %v596_v60  ;;  %v591_v62 = vadd.f32 %v1274_v22, %v590_v61 }
 0x1ba   :  { %v945_v63 = vpop.f32.mrf.mxu1 }
 0x1bb   :  { %677 = vst [vmem:[#allocation2 + $0x90] sm:$0xff] %v591_v62  ;;  %v606_v0 = vadd.f32 %v945_v63, %v1274_v22 }
 0x1bc   :  { %v600_v1 = vpop.f32.mrf.mxu1 }
 0x1bd   :  { %680 = vst [vmem:[#allocation2 + $0xa8] sm:$0xff] %v606_v0  ;;  %v601_v2 = vadd.f32 %v1274_v22, %v600_v1 }
 0x1be   :  { %v948_v3 = vpop.f32.mrf.mxu1 }
 0x1bf   :  { %679 = vst [vmem:[#allocation2 + $0xa0] sm:$0xff] %v601_v2  ;;  %v616_v4 = vadd.f32 %v948_v3, %v1274_v22 }
 0x1c0   :  { %v610_v5 = vpop.f32.mrf.mxu1 }
 0x1c1   :  { %682 = vst [vmem:[#allocation2 + $0xb8] sm:$0xff] %v616_v4  ;;  %v611_v6 = vadd.f32 %v1274_v22, %v610_v5 }
 0x1c2   :  { %v951_v7 = vpop.f32.mrf.mxu1 }
 0x1c3   :  { %681 = vst [vmem:[#allocation2 + $0xb0] sm:$0xff] %v611_v6  ;;  %v626_v8 = vadd.f32 %v951_v7, %v1274_v22 }
 0x1c4   :  { %v620_v9 = vpop.f32.mrf.mxu1 }
 0x1c5   :  { %684 = vst [vmem:[#allocation2 + $0xc8] sm:$0xff] %v626_v8  ;;  %v621_v10 = vadd.f32 %v1274_v22, %v620_v9 }
 0x1c6   :  { %v954_v11 = vpop.f32.mrf.mxu1 }
 0x1c7   :  { %683 = vst [vmem:[#allocation2 + $0xc0] sm:$0xff] %v621_v10  ;;  %v636_v12 = vadd.f32 %v954_v11, %v1274_v22 }
 0x1c8   :  { %v630_v13 = vpop.f32.mrf.mxu1 }
 0x1c9   :  { %686 = vst [vmem:[#allocation2 + $0xd8] sm:$0xff] %v636_v12  ;;  %v631_v14 = vadd.f32 %v1274_v22, %v630_v13 }
 0x1ca   :  { %v957_v15 = vpop.f32.mrf.mxu1 }
 0x1cb   :  { %685 = vst [vmem:[#allocation2 + $0xd0] sm:$0xff] %v631_v14  ;;  %v646_v16 = vadd.f32 %v957_v15, %v1274_v22 }
 0x1cc   :  { %v640_v17 = vpop.f32.mrf.mxu1 }
 0x1cd   :  { %688 = vst [vmem:[#allocation2 + $0xe8] sm:$0xff] %v646_v16  ;;  %v641_v18 = vadd.f32 %v1274_v22, %v640_v17 }
 0x1ce   :  { %v960_v19 = vpop.f32.mrf.mxu1 }
 0x1cf   :  { %687 = vst [vmem:[#allocation2 + $0xe0] sm:$0xff] %v641_v18  ;;  %v656_v20 = vadd.f32 %v960_v19, %v1274_v22 }
 0x1d0   :  { %v650_v21 = vpop.f32.mrf.mxu1 }
 0x1d1   :  { %690 = vst [vmem:[#allocation2 + $0xf8] sm:$0xff] %v656_v20  ;;  %v651_v23 = vadd.f32 %v1274_v22, %v650_v21 }
 0x1d3   :  { %689 = vst [vmem:[#allocation2 + $0xf0] sm:$0xff] %v651_v23 }
 0x1d4   :  { %1007 = shalt.err (!%p1004_p4)
}
 0x1d5   :  { %s1019_s15 = smov 128   ;;  %s1020_s16 = smov 8  }
 0x1d6   :  { %702 = dma.vmem_to_hbm [thread:$0]  %s697_s13, 4096, %s1315_s4, [#allocation3], %s1019_s15, %s1019_s15, %s1020_s16  }
 0x1d7   :  { %1016 = dma.done.wait [#allocation3], 4096  }
 0x1d8   :  { %1017 = vsyncadd [#allocation3], 4294963200 }
 0x1d9   :  { %706 = vsyncpa [#allocation3], 1 }

</bundles_post_ra>
